<compile_context>
chip_gen: v5e
topology: v5e:2x2
jax: 0.10.0
libtpu: 0.0.40
codegen_flags: <defaults>
</compile_context>

<pallas_src>
import math

import jax
import jax.numpy as jnp
from jax.experimental import pallas as pl
from jax.experimental.pallas import tpu as pltpu


def _round_up(x, m):
    return ((x + m - 1) // m) * m


# ------------------------------ Pallas kernel --------------------------------

def timestep_embedder_kernel(t_ref, freqs_ref, w1_ref, b1_ref, w2_ref, b2_ref,
                             out_ref):
    # t_ref     (TB, 1)        timesteps (f32) for this row tile
    # freqs_ref (1, HALF)      sinusoid frequencies (HALF = freq_dim // 2)
    # w1_ref    (2*HALF, Hp)   rows [0:HALF] multiply cos, [HALF:] multiply sin
    # b1_ref    (1, Hp)
    # w2_ref    (Hp, Hp)
    # b2_ref    (1, Hp)
    # out_ref   (TB, Hp)
    half = freqs_ref.shape[1]

    # sinusoidal embedding: args = t * freqs  (VPU broadcast multiply)
    args = t_ref[...] * freqs_ref[...]                 # (TB, HALF)
    cos_e = jnp.cos(args)
    sin_e = jnp.sin(args)

    # first Linear; K split so no lane-axis concat of [cos, sin] is needed
    h = (jnp.dot(cos_e, w1_ref[:half, :], preferred_element_type=jnp.float32)
         + jnp.dot(sin_e, w1_ref[half:, :], preferred_element_type=jnp.float32)
         + b1_ref[...])                                # (TB, Hp)

    # SiLU: h * sigmoid(h); exp + reciprocal both go to the EUP slot
    h = h * pl.reciprocal(1.0 + jnp.exp(-h), approx=True)

    # second Linear (lane-dense output store)
    out_ref[...] = (jnp.dot(h, w2_ref[...], preferred_element_type=jnp.float32)
                    + b2_ref[...])                     # (TB, Hp)


# ------------------------------ wrapper ---------------------------------------

def timestep_embedder(t, w1, b1, w2, b2, *, frequency_embedding_size=256,
                      max_period=10000.0, row_tile=None):
    """t: (B,) int/float timesteps.  w1: (freq, H), b1: (H,), w2: (H, H), b2: (H,)."""
    # TODO(synk): odd frequency_embedding_size zero-pad branch not implemented
    # (module default 256 is even).
    assert frequency_embedding_size % 2 == 0
    half = frequency_embedding_size // 2
    hidden = w2.shape[1]
    B = t.shape[0]

    if row_tile is None:
        row_tile = min(256, _round_up(B, 8))            # sublane-aligned row tile
    Bp = _round_up(B, row_tile)
    Hp = _round_up(hidden, 128)                         # lane-dense hidden dim

    # zero-pad weights/biases to the lane-dense hidden width (exact: padded
    # W1 columns and W2 rows/cols are zero, padded b's are zero)
    w1p = jnp.zeros((frequency_embedding_size, Hp), jnp.float32).at[:, :hidden].set(
        w1.astype(jnp.float32))
    b1p = jnp.zeros((1, Hp), jnp.float32).at[0, :hidden].set(b1.astype(jnp.float32))
    w2p = jnp.zeros((Hp, Hp), jnp.float32).at[:hidden, :hidden].set(
        w2.astype(jnp.float32))
    b2p = jnp.zeros((1, Hp), jnp.float32).at[0, :hidden].set(b2.astype(jnp.float32))

    t_col = jnp.zeros((Bp, 1), jnp.float32).at[:B, 0].set(t.astype(jnp.float32))

    freqs = jnp.exp(-math.log(max_period)
                    * jnp.arange(half, dtype=jnp.float32) / half)[None, :]

    grid = (Bp // row_tile,)
    out = pl.pallas_call(
        timestep_embedder_kernel,
        out_shape=jax.ShapeDtypeStruct((Bp, Hp), jnp.float32),
        grid_spec=pltpu.PrefetchScalarGridSpec(
            num_scalar_prefetch=0,
            grid=grid,
            in_specs=[
                pl.BlockSpec((row_tile, 1), lambda i: (i, 0)),                  # t
                pl.BlockSpec((1, half), lambda i: (0, 0)),                      # freqs
                pl.BlockSpec((frequency_embedding_size, Hp), lambda i: (0, 0)), # W1
                pl.BlockSpec((1, Hp), lambda i: (0, 0)),                        # b1
                pl.BlockSpec((Hp, Hp), lambda i: (0, 0)),                       # W2
                pl.BlockSpec((1, Hp), lambda i: (0, 0)),                        # b2
            ],
            out_specs=pl.BlockSpec((row_tile, Hp), lambda i: (i, 0)),
        ),
        compiler_params=pltpu.CompilerParams(
            dimension_semantics=("parallel",),   # rows independent -> megacore OK
        ),
    )(t_col, freqs, w1p, b1p, w2p, b2p)

    return out[:B, :hidden]


# ------------------------------ pure-JAX reference ----------------------------

def timestep_embedder_ref(t, w1, b1, w2, b2, frequency_embedding_size=256):
    half = frequency_embedding_size // 2
    freqs = jnp.exp(-math.log(10000.0)
                    * jnp.arange(half, dtype=jnp.float32) / half)
    args = t.astype(jnp.float32)[:, None] * freqs[None, :]
    emb = jnp.concatenate([jnp.cos(args), jnp.sin(args)], axis=-1)
    h = emb @ w1 + b1
    h = h * jax.nn.sigmoid(h)
    return h @ w2 + b2


# ------------------------------------ main ------------------------------------

if __name__ == "__main__":
    B = 2                      # batch of timesteps
    hidden = 32                # hidden_size
    freq_dim = 256             # frequency_embedding_size (module default)

    key = jax.random.PRNGKey(0)
    k_t, k_w1, k_b1, k_w2, k_b2 = jax.random.split(key, 5)

    t = jax.random.randint(k_t, (B,), 0, 1000)
    w1 = jax.random.normal(k_w1, (freq_dim, hidden), dtype=jnp.float32) * 0.02
    b1 = jax.random.normal(k_b1, (hidden,), dtype=jnp.float32) * 0.02
    w2 = jax.random.normal(k_w2, (hidden, hidden), dtype=jnp.float32) * 0.02
    b2 = jax.random.normal(k_b2, (hidden,), dtype=jnp.float32) * 0.02

    out = timestep_embedder(t, w1, b1, w2, b2,
                            frequency_embedding_size=freq_dim)
    out = jax.block_until_ready(out)

    ref = timestep_embedder_ref(t, w1, b1, w2, b2, freq_dim)
    assert out.shape == (B, hidden), out.shape
    assert jnp.allclose(out, ref, atol=1e-3, rtol=1e-3), (out, ref)

    print("KERNEL_OK")
</pallas_src>

<mosaic_0001>
module attributes {stable_mosaic.version = 11 : i64} {
  func.func @timestep_embedder_kernel(%arg0: i32, %arg1: memref<8x1xf32, #tpu.memory_space<vmem>>, %arg2: memref<1x128xf32, #tpu.memory_space<vmem>>, %arg3: memref<256x128xf32, #tpu.memory_space<vmem>>, %arg4: memref<1x128xf32, #tpu.memory_space<vmem>>, %arg5: memref<128x128xf32, #tpu.memory_space<vmem>>, %arg6: memref<1x128xf32, #tpu.memory_space<vmem>>, %arg7: memref<8x128xf32, #tpu.memory_space<vmem>>) attributes {dimension_semantics = [#tpu.dimension_semantics<parallel>], iteration_bounds = array<i64: 1>, scalar_prefetch = 0 : i64, scratch_operands = 0 : i64, tpu.core_type = #tpu.core_type<tc>, window_params = [{transform_indices = @transform_0, window_bounds = array<i64: 8, 1>}, {pipeline_mode = #tpu.pipeline_mode<synchronous>, transform_indices = @transform_1, window_bounds = array<i64: 1, 128>}, {pipeline_mode = #tpu.pipeline_mode<synchronous>, transform_indices = @transform_2, window_bounds = array<i64: 256, 128>}, {pipeline_mode = #tpu.pipeline_mode<synchronous>, transform_indices = @transform_3, window_bounds = array<i64: 1, 128>}, {pipeline_mode = #tpu.pipeline_mode<synchronous>, transform_indices = @transform_4, window_bounds = array<i64: 128, 128>}, {pipeline_mode = #tpu.pipeline_mode<synchronous>, transform_indices = @transform_5, window_bounds = array<i64: 1, 128>}, {transform_indices = @transform_6, window_bounds = array<i64: 8, 128>}]} {
    %c0 = arith.constant 0 : index
    %c0_0 = arith.constant 0 : index
    %0 = vector.load %arg1[%c0, %c0_0] : memref<8x1xf32, #tpu.memory_space<vmem>>, vector<8x1xf32>
    %c0_1 = arith.constant 0 : index
    %c0_2 = arith.constant 0 : index
    %1 = vector.load %arg2[%c0_1, %c0_2] : memref<1x128xf32, #tpu.memory_space<vmem>>, vector<1x128xf32>
    %2 = vector.broadcast %0 : vector<8x1xf32> to vector<8x128xf32>
    %3 = vector.broadcast %1 : vector<1x128xf32> to vector<8x128xf32>
    %4 = arith.mulf %2, %3 : vector<8x128xf32>
    %5 = math.cos %4 : vector<8x128xf32>
    %6 = math.sin %4 : vector<8x128xf32>
    %c0_3 = arith.constant 0 : index
    %c0_4 = arith.constant 0 : index
    %7 = vector.load %arg3[%c0_3, %c0_4] : memref<256x128xf32, #tpu.memory_space<vmem>>, vector<128x128xf32>
    %cst = arith.constant dense<0.000000e+00> : vector<8x128xf32>
    %8 = tpu.matmul %5, %7, %cst {dimension_numbers = #tpu.dot_dimension_numbers<[1], [0], [0], [1], [0, 0, 1, 1], [], []>} : vector<8x128xf32>, vector<128x128xf32>, vector<8x128xf32> -> vector<8x128xf32>
    %c128 = arith.constant 128 : index
    %c0_5 = arith.constant 0 : index
    %9 = vector.load %arg3[%c128, %c0_5] : memref<256x128xf32, #tpu.memory_space<vmem>>, vector<128x128xf32>
    %cst_6 = arith.constant dense<0.000000e+00> : vector<8x128xf32>
    %10 = tpu.matmul %6, %9, %cst_6 {dimension_numbers = #tpu.dot_dimension_numbers<[1], [0], [0], [1], [0, 0, 1, 1], [], []>} : vector<8x128xf32>, vector<128x128xf32>, vector<8x128xf32> -> vector<8x128xf32>
    %11 = arith.addf %8, %10 : vector<8x128xf32>
    %c0_7 = arith.constant 0 : index
    %c0_8 = arith.constant 0 : index
    %12 = vector.load %arg4[%c0_7, %c0_8] : memref<1x128xf32, #tpu.memory_space<vmem>>, vector<1x128xf32>
    %13 = vector.broadcast %12 : vector<1x128xf32> to vector<8x128xf32>
    %14 = arith.addf %11, %13 : vector<8x128xf32>
    %cst_9 = arith.constant 0.000000e+00 : f32
    %15 = vector.broadcast %cst_9 : f32 to vector<8x128xf32>
    %16 = arith.subf %15, %14 : vector<8x128xf32>
    %17 = math.exp %16 : vector<8x128xf32>
    %cst_10 = arith.constant 1.000000e+00 : f32
    %18 = vector.broadcast %cst_10 : f32 to vector<8x128xf32>
    %19 = arith.addf %18, %17 : vector<8x128xf32>
    %20 = tpu.reciprocal %19 {approx = true} : vector<8x128xf32> -> vector<8x128xf32>
    %21 = arith.mulf %14, %20 : vector<8x128xf32>
    %c0_11 = arith.constant 0 : index
    %c0_12 = arith.constant 0 : index
    %22 = vector.load %arg5[%c0_11, %c0_12] : memref<128x128xf32, #tpu.memory_space<vmem>>, vector<128x128xf32>
    %cst_13 = arith.constant dense<0.000000e+00> : vector<8x128xf32>
    %23 = tpu.matmul %21, %22, %cst_13 {dimension_numbers = #tpu.dot_dimension_numbers<[1], [0], [0], [1], [0, 0, 1, 1], [], []>} : vector<8x128xf32>, vector<128x128xf32>, vector<8x128xf32> -> vector<8x128xf32>
    %c0_14 = arith.constant 0 : index
    %c0_15 = arith.constant 0 : index
    %24 = vector.load %arg6[%c0_14, %c0_15] : memref<1x128xf32, #tpu.memory_space<vmem>>, vector<1x128xf32>
    %25 = vector.broadcast %24 : vector<1x128xf32> to vector<8x128xf32>
    %26 = arith.addf %23, %25 : vector<8x128xf32>
    %c0_16 = arith.constant 0 : index
    %c0_17 = arith.constant 0 : index
    %27 = vector.load %arg7[%c0_16, %c0_17] : memref<8x128xf32, #tpu.memory_space<vmem>>, vector<8x128xf32>
    tpu.vector_store %arg7[%c0_16, %c0_17], %26 {strides = array<i32>} : memref<8x128xf32, #tpu.memory_space<vmem>>, vector<8x128xf32>,
    return
  }
  func.func @transform_0(%arg0: i32) -> (i32, i32) {
    %c0_i32 = arith.constant 0 : i32
    %c0_i32_0 = arith.constant 0 : i32
    return %arg0, %c0_i32 : i32, i32
  }
  func.func @transform_1(%arg0: i32) -> (i32, i32) {
    %c0_i32 = arith.constant 0 : i32
    %c0_i32_0 = arith.constant 0 : i32
    %c0_i32_1 = arith.constant 0 : i32
    return %c0_i32, %c0_i32_0 : i32, i32
  }
  func.func @transform_2(%arg0: i32) -> (i32, i32) {
    %c0_i32 = arith.constant 0 : i32
    %c0_i32_0 = arith.constant 0 : i32
    %c0_i32_1 = arith.constant 0 : i32
    return %c0_i32, %c0_i32_0 : i32, i32
  }
  func.func @transform_3(%arg0: i32) -> (i32, i32) {
    %c0_i32 = arith.constant 0 : i32
    %c0_i32_0 = arith.constant 0 : i32
    %c0_i32_1 = arith.constant 0 : i32
    return %c0_i32, %c0_i32_0 : i32, i32
  }
  func.func @transform_4(%arg0: i32) -> (i32, i32) {
    %c0_i32 = arith.constant 0 : i32
    %c0_i32_0 = arith.constant 0 : i32
    %c0_i32_1 = arith.constant 0 : i32
    return %c0_i32, %c0_i32_0 : i32, i32
  }
  func.func @transform_5(%arg0: i32) -> (i32, i32) {
    %c0_i32 = arith.constant 0 : i32
    %c0_i32_0 = arith.constant 0 : i32
    %c0_i32_1 = arith.constant 0 : i32
    return %c0_i32, %c0_i32_0 : i32, i32
  }
  func.func @transform_6(%arg0: i32) -> (i32, i32) {
    %c0_i32 = arith.constant 0 : i32
    %c0_i32_0 = arith.constant 0 : i32
    return %arg0, %c0_i32 : i32, i32
  }
}

</mosaic_0001>

<bundles_post_ra>
// kernel: tpu_custom_call.1
= control target key start
LH: loop header
LB: loop body
LE: loop exit
PB: predicated region body
PF: predicated region fallthrough
CT: control target
= control target key end

     0   :  { %11 = vsyncpa [#allocation3], 0  ;;  %s751_s0 = inlined_call_operand.vmem [shape: f32[8,1], index: 0, kind: input, shape index: {}]   ;;  %s752_s1 = inlined_call_operand.vmem [shape: f32[1,128], index: 1, kind: input, shape index: {}]   ;;  %s753_s2 = inlined_call_operand.hbm [shape: f32[256,128], index: 2, kind: input, shape index: {}]   ;;  %s754_s3 = inlined_call_operand.vmem [shape: f32[1,128], index: 3, kind: input, shape index: {}]   ;;  %s755_s4 = inlined_call_operand.hbm [shape: f32[128,128], index: 4, kind: input, shape index: {}]   ;;  %s756_s5 = inlined_call_operand.vmem [shape: f32[1,128], index: 5, kind: input, shape index: {}]   ;;  %s757_s6 = inlined_call_operand.hbm [shape: f32[8,128], index: 6, kind: output, shape index: {}]  }
   0x1   :  { %12 = vsyncpa [#allocation6], 0 }
   0x2   :  { %13 = vsyncpa [#allocation4], 0  ;;  %s22_s23 = sshll.u32 %s753_s2, 4  ;;  %s622_s24 = smov [#allocation2]   ;;  %s23_s23 = int_to_ptr.hbm [resolvable:$true] %s22_s23 }
   0x3   :  { %s24_s25 = sshll.u32 %s622_s24, 4  ;;  %s37_s28 = sshll.u32 %s755_s4, 4  ;;  %s25_s25 = int_to_ptr.vmem [resolvable:$true] %s24_s25  ;;  %s38_s28 = int_to_ptr.hbm [resolvable:$true] %s37_s28 }
   0x4   :  { %s623_s29 = smov 128   ;;  %s624_s30 = smov 8  }
   0x5   :  { %30 = dma.hbm_to_vmem [thread:$0]  %s23_s23, 4096, %s25_s25, [#allocation3], %s623_s29, %s623_s29, %s624_s30  }
   0x6   :  { %s625_s7 = smov [#allocation5]  }
   0x7   :  { %s39_s8 = sshll.u32 %s625_s7, 4  ;;  %s40_s8 = int_to_ptr.vmem [resolvable:$true] %s39_s8 }
   0x8   :  { %45 = dma.hbm_to_vmem [thread:$0]  %s38_s28, 2048, %s40_s8, [#allocation6], %s623_s29, %s623_s29, %s624_s30  }
   0x9   :  { %616 = dma.done.wait [#allocation3], 4096  }
   0xa   :  { %617 = vsyncadd [#allocation3], 4294963200 }
   0xb   :  { %618 = dma.done.wait [#allocation6], 2048  }
   0xc   :  { %619 = vsyncadd [#allocation6], 4294965248  ;;  %v626_v0 = vmov 0   ;;  %v56_v1 = vld [vmem:[%s751_s0] sm:$0xff]  ;;  %v407_v2 = vld [vmem:[#allocation2 + $0xf8] sm:$0xff]  ;;  %s633_s13 = smov [#allocation7]  }
   0xd   :  { %536 = vset.pattern.permute.xlu0 %v626_v0  ;;  %v391_v3 = vld [vmem:[#allocation2 + $0x78] sm:$0xff]  ;;  %v406_v4 = vld [vmem:[#allocation2 + $0xf0] sm:$0xff]  ;;  %408 = vmatpush.msra.mxu0 %v407_v2  ;;  %v405_v6 = vld [vmem:[#allocation2 + $0xe8] sm:$0xff]  ;;  %v627_v46 = vmov 2102212464   ;;  %s505_s14 = sshll.u32 %s633_s13, 4  ;;  %s506_s14 = int_to_ptr.vmem [resolvable:$true] %s505_s14 }
   0xe   :  { %60 = vperm.xlu0 %536, %v56_v1   ;;  %428 = vmatpush.msra.mxu1 %v391_v3  ;;  %v390_v5 = vld [vmem:[#allocation2 + $0x70] sm:$0xff]  ;;  %v389_v7 = vld [vmem:[#allocation2 + $0x68] sm:$0xff]  ;;  %v404_v8 = vld [vmem:[#allocation2 + $0xe0] sm:$0xff]  ;;  %v628_v48 = vmov 920167782   ;;  %s507_s16 = sshll.u32 %s757_s6, 4  ;;  %s508_s16 = int_to_ptr.hbm [resolvable:$true] %s507_s16 }
   0xf   :  { %409 = vmatpush.msra.mxu0 %v406_v4  ;;  %v388_v9 = vld [vmem:[#allocation2 + $0x60] sm:$0xff]  ;;  %v403_v10 = vld [vmem:[#allocation2 + $0xd8] sm:$0xff]  ;;  %v402_v13 = vld [vmem:[#allocation2 + $0xd0] sm:$0xff]  ;;  %v629_v50 = vmov 683565275  }
  0x10   :  { %429 = vmatpush.msra.mxu1 %v390_v5  ;;  %v387_v11 = vld [vmem:[#allocation2 + $0x58] sm:$0xff]  ;;  %v537_v12 = vld [vmem:[%s752_s1] ss:$0 sm:$0xff]  ;;  %v386_v14 = vld [vmem:[#allocation2 + $0x50] sm:$0xff]  ;;  %v630_v53 = vmov 1326507024  }
  0x11   :  { %410 = vmatpush.msra.mxu0 %v405_v6  ;;  %v401_v15 = vld [vmem:[#allocation2 + $0xc8] sm:$0xff]  ;;  %v400_v19 = vld [vmem:[#allocation2 + $0xc0] sm:$0xff]  ;;  %v399_v22 = vld [vmem:[#allocation2 + $0xb8] sm:$0xff]  ;;  %v631_v57 = vmov 2475754826  }
  0x12   :  { %430 = vmatpush.msra.mxu1 %v389_v7  ;;  %v385_v16 = vld [vmem:[#allocation2 + $0x48] sm:$0xff]  ;;  %v384_v20 = vld [vmem:[#allocation2 + $0x40] sm:$0xff]  ;;  %v383_v23 = vld [vmem:[#allocation2 + $0x38] sm:$0xff]  ;;  %v632_v60 = vmov 2131351028  }
  0x13   :  { %411 = vmatpush.msra.mxu0 %v404_v8  ;;  %v398_v25 = vld [vmem:[#allocation2 + $0xb0] sm:$0xff]  ;;  %v397_v28 = vld [vmem:[#allocation2 + $0xa8] sm:$0xff]  ;;  %v396_v32 = vld [vmem:[#allocation2 + $0xa0] sm:$0xff] }
  0x14   :  { %431 = vmatpush.msra.mxu1 %v388_v9  ;;  %v382_v26 = vld [vmem:[#allocation2 + $0x30] sm:$0xff]  ;;  %v381_v29 = vld [vmem:[#allocation2 + $0x28] sm:$0xff]  ;;  %v380_v33 = vld [vmem:[#allocation2 + $0x20] sm:$0xff] }
  0x15   :  { %412 = vmatpush.msra.mxu0 %v403_v10  ;;  %v395_v34 = vld [vmem:[#allocation2 + $0x98] sm:$0xff]  ;;  %v394_v39 = vld [vmem:[#allocation2 + $0x90] sm:$0xff]  ;;  %v393_v42 = vld [vmem:[#allocation2 + $0x88] sm:$0xff] }
  0x16   :  { %432 = vmatpush.msra.mxu1 %v387_v11  ;;  %v379_v35 = vld [vmem:[#allocation2 + $0x18] sm:$0xff]  ;;  %v378_v40 = vld [vmem:[#allocation2 + $0x10] sm:$0xff]  ;;  %v377_v43 = vld [vmem:[#allocation2 + $0x8] sm:$0xff] }
  0x17   :  { %413 = vmatpush.msra.mxu0 %v402_v13  ;;  %v392_v55 = vld [vmem:[#allocation2 + $0x80] sm:$0xff] }
  0x18   :  { %433 = vmatpush.msra.mxu1 %v386_v14  ;;  %v376_v56 = vld [vmem:[#allocation2] sm:$0xff] }
  0x19   :  { %414 = vmatpush.msra.mxu0 %v401_v15 }
  0x1a   :  { %434 = vmatpush.msra.mxu1 %v385_v16 }
  0x1b   :  { %415 = vmatpush.msra.mxu0 %v400_v19 }
  0x1c   :  { %435 = vmatpush.msra.mxu1 %v384_v20 }
  0x1d   :  { %416 = vmatpush.msra.mxu0 %v399_v22 }
  0x1e   :  { %436 = vmatpush.msra.mxu1 %v383_v23 }
  0x1f   :  { %417 = vmatpush.msra.mxu0 %v398_v25 }
  0x20   :  { %437 = vmatpush.msra.mxu1 %v382_v26 }
  0x21   :  { %418 = vmatpush.msra.mxu0 %v397_v28 }
  0x22   :  { %438 = vmatpush.msra.mxu1 %v381_v29 }
  0x23   :  { %419 = vmatpush.msra.mxu0 %v396_v32 }
  0x24   :  { %439 = vmatpush.msra.mxu1 %v380_v33 }
  0x25   :  { %420 = vmatpush.msra.mxu0 %v395_v34 }
  0x26   :  { %440 = vmatpush.msra.mxu1 %v379_v35 }
  0x27   :  { %421 = vmatpush.msra.mxu0 %v394_v39 }
  0x28   :  { %441 = vmatpush.msra.mxu1 %v378_v40 }
  0x29   :  { %422 = vmatpush.msra.mxu0 %v393_v42 }
  0x2a   :  { %442 = vmatpush.msra.mxu1 %v377_v43 }
  0x2b   :  { %423 = vmatpush.msra.mxu0 %v392_v55 }
  0x2c   :  { %443 = vmatpush.msra.mxu1 %v376_v56 }
  0x80   :  { %v61_v17 = vpop.permute.xlu0 %60 }
  0x81   :  { %v682_v18 = vmul.f32 %v537_v12, %v61_v17 }
  0x83   :  { %v70_v21 = vand.u32 2139095040, %v682_v18  ;;  %v67_v30 = vand.u32 2147483647, %v682_v18  ;;  %vm69_vm12 = vcmp.lt.s32.totalorder %v682_v18, 0 }
  0x85   :  { %v71_v24 = vshrl.u32 %v70_v21, 23  ;;  %v74_v36 = vand.u32 8388607, %v67_v30  ;;  %vm68_vm13 = vcmp.le.f32.partialorder %v67_v30, 0.7853982 }
  0x87   :  { %v518_v27 = vadd.s32 4294967169, %v71_v24  ;;  %v75_v44 = vor.u32 8388608, %v74_v36 }
  0x89   :  { %v77_v31 = vadd.s32 1, %v518_v27  ;;  %v698_v4 = vshll.u32 %v75_v44, 8 }
  0x8b   :  { %vm78_vm0 = vcmp.gt.s32.totalorder %v77_v31, 0  ;;  %v116_v14 = vand.u32 65535, %v698_v4  ;;  %v117_v16 = vshrl.u32 %v698_v4, 16 }
  0x8c   :  { %v79_v37 = vsel %vm78_vm0, %v77_v31, 0 }
  0x8d   :  { %v81_v38 = vand.u32 31, %v79_v37  ;;  %v690_v45 = vshrl.u32 %v79_v37, 5 }
  0x8f   :  { %v688_v41 = vsub.s32 32, %v81_v38  ;;  %v93_v47 = vshll.u32 %v627_v46, %v81_v38  ;;  %v96_v49 = vshll.u32 %v628_v48, %v81_v38  ;;  %v84_v51 = vshll.u32 %v629_v50, %v81_v38 }
  0x90   :  { %v87_v59 = vshll.u32 %v631_v57, %v81_v38  ;;  %v90_v62 = vshll.u32 %v632_v60, %v81_v38  ;;  %vm102_vm1 = vcmp.lt.s32.totalorder %v690_v45, 4  ;;  %vm99_vm2 = vcmp.lt.s32.totalorder %v690_v45, 1 }
  0x91   :  { %v94_v52 = vshrl.u32 %v628_v48, %v688_v41  ;;  %v97_v54 = vshrl.u32 %v630_v53, %v688_v41  ;;  %v85_v58 = vshrl.u32 %v631_v57, %v688_v41  ;;  %v88_v61 = vshrl.u32 %v632_v60, %v688_v41 }
  0x92   :  { %v91_v63 = vshrl.u32 %v627_v46, %v688_v41  ;;  %vm101_vm3 = vcmp.lt.s32.totalorder %v690_v45, 3  ;;  %vm100_vm4 = vcmp.lt.s32.totalorder %v690_v45, 2  ;;  %v83_v42 = vshrl.u32 %v629_v50, %v688_v41 }
  0x93   :  { %v95_v1 = vor.u32 %v94_v52, %v93_v47  ;;  %v98_v2 = vor.u32 %v97_v54, %v96_v49  ;;  %v86_v3 = vor.u32 %v85_v58, %v84_v51  ;;  %v89_v5 = vor.u32 %v88_v61, %v87_v59 }
  0x94   :  { %v92_v6 = vor.u32 %v91_v63, %v90_v62 }
  0x95   :  { %v108_v7 = vsel %vm102_vm1, %v95_v1, 920167782  ;;  %v112_v8 = vsel %vm102_vm1, %v98_v2, 1326507024  ;;  %v107_v9 = vsel %vm99_vm2, %v86_v3, %v89_v5  ;;  %v103_v49 = vsel %vm99_vm2, %v83_v42, %v86_v3 }
  0x96   :  { %v109_v10 = vsel %vm101_vm3, %v92_v6, %v108_v7  ;;  %v111_v11 = vsel %vm99_vm2, %v89_v5, %v92_v6  ;;  %v113_v13 = vsel %vm101_vm3, %v95_v1, %v112_v8  ;;  %v104_v38 = vsel %vm102_vm1, %v92_v6, 2102212464 }
  0x97   :  { %v110_v12 = vsel %vm100_vm4, %v107_v9, %v109_v10  ;;  %v114_v15 = vsel %vm100_vm4, %v111_v11, %v113_v13  ;;  %v105_v51 = vsel %vm101_vm3, %v89_v5, %v104_v38 }
  0x98   :  { %v140_v17 = vand.u32 65535, %v110_v12  ;;  %v141_v19 = vshrl.u32 %v110_v12, 16  ;;  %v118_v20 = vand.u32 65535, %v114_v15  ;;  %v119_v21 = vshrl.u32 %v114_v15, 16 }
  0x99   :  { %v106_v50 = vsel %vm100_vm4, %v103_v49, %v105_v51  ;;  %vm210_vm4 = vweird.f32 %v682_v18 }
  0x9a   :  { %v143_v22 = vmul.u32 %v141_v19, %v116_v14  ;;  %v144_v23 = vmul.u32 %v140_v17, %v117_v16  ;;  %v121_v24 = vmul.u32 %v119_v21, %v116_v14  ;;  %v122_v25 = vmul.u32 %v118_v20, %v117_v16 }
  0x9b   :  { %v142_v26 = vmul.u32 %v140_v17, %v116_v14  ;;  %v120_v28 = vmul.u32 %v118_v20, %v116_v14  ;;  %v145_v31 = vmul.u32 %v141_v19, %v117_v16  ;;  %v123_v32 = vmul.u32 %v119_v21, %v117_v16  ;;  %v474_v16 = vld [vmem:[#allocation5 + $0x78] sm:$0xff]  ;;  %v473_v17 = vld [vmem:[#allocation5 + $0x70] sm:$0xff] }
  0x9c   :  { %v146_v27 = vshll.u32 %v143_v22, 16  ;;  %v124_v29 = vshll.u32 %v121_v24, 16  ;;  %v148_v33 = vshll.u32 %v144_v23, 16  ;;  %v126_v35 = vshll.u32 %v122_v25, 16  ;;  %479 = vmatpush.msra.mxu2 %v474_v16  ;;  %v539_v16 = vld [vmem:[%s756_s5] ss:$0 sm:$0xff] }
  0x9d   :  { %v147_v47 = vshrl.u32 %v143_v22, 16  ;;  %v125_v52 = vshrl.u32 %v121_v24, 16  ;;  %v149_v54 = vshrl.u32 %v144_v23, 16  ;;  %v127_v56 = vshrl.u32 %v122_v25, 16 }
  0x9e   :  { %vm150_vm5 = vc.u32 %v142_v26, %v146_v27  ;;  %v152_v34 = vadd.s32 %v146_v27, %v142_v26  ;;  %vm128_vm6 = vc.u32 %v120_v28, %v124_v29  ;;  %v130_v36 = vadd.s32 %v124_v29, %v120_v28  ;;  %480 = vmatpush.msra.mxu2 %v473_v17 }
  0x9f   :  { %v151_v37 = vsel %vm150_vm5, 1, %v626_v0  ;;  %v129_v39 = vsel %vm128_vm6, 1, %v626_v0  ;;  %v160_v60 = vmul.u32 %v698_v4, %v106_v50 }
  0xa0   :  { %v153_v40 = vadd.s32 %v151_v37, %v145_v31  ;;  %vm154_vm7 = vc.u32 %v152_v34, %v148_v33  ;;  %v131_v43 = vadd.s32 %v129_v39, %v123_v32  ;;  %vm132_vm8 = vc.u32 %v130_v36, %v126_v35 }
  0xa1   :  { %v155_v44 = vsel %vm154_vm7, 1, %v626_v0  ;;  %v133_v46 = vsel %vm132_vm8, 1, %v626_v0  ;;  %v156_v0 = vadd.s32 %v152_v34, %v148_v33 }
  0xa2   :  { %v157_v48 = vadd.s32 %v155_v44, %v153_v40  ;;  %v135_v53 = vadd.s32 %v133_v46, %v131_v43 }
  0xa4   :  { %v158_v55 = vadd.s32 %v157_v48, %v147_v47  ;;  %v136_v41 = vadd.s32 %v135_v53, %v125_v52 }
  0xa6   :  { %v159_v57 = vadd.s32 %v158_v55, %v149_v54  ;;  %v137_v58 = vadd.s32 %v136_v41, %v127_v56 }
  0xa8   :  { %v163_v59 = vadd.s32 1, %v159_v57  ;;  %vm162_vm9 = vc.u32 %v137_v58, %v156_v0  ;;  %v161_v9 = vadd.s32 %v156_v0, %v137_v58  ;;  %v471_v58 = vld [vmem:[#allocation5 + $0x60] sm:$0xff]  ;;  %v470_v0 = vld [vmem:[#allocation5 + $0x58] sm:$0xff] }
  0xaa   :  { %v164_v61 = vsel %vm162_vm9, %v163_v59, %v159_v57  ;;  %v472_v57 = vld [vmem:[#allocation5 + $0x68] sm:$0xff]  ;;  %v469_v59 = vld [vmem:[#allocation5 + $0x50] sm:$0xff] }
  0xab   :  { %v165_v62 = vadd.s32 %v164_v61, %v160_v60  ;;  %481 = vmatpush.msra.mxu2 %v472_v57  ;;  %v468_v60 = vld [vmem:[#allocation5 + $0x48] sm:$0xff]  ;;  %v467_v61 = vld [vmem:[#allocation5 + $0x40] sm:$0xff] }
  0xad   :  { %v166_v63 = vadd.s32 536870912, %v165_v62  ;;  %482 = vmatpush.msra.mxu2 %v471_v58 }
  0xaf   :  { %v167_v1 = vshrl.u32 %v166_v63, 30  ;;  %483 = vmatpush.msra.mxu2 %v470_v0  ;;  %v464_v63 = vld [vmem:[#allocation5 + $0x28] sm:$0xff] }
  0xb1   :  { %v168_v2 = vshll.u32 %v167_v1, 30  ;;  %v191_v25 = vsub.s32 4, %v167_v1  ;;  %484 = vmatpush.msra.mxu2 %v469_v59 }
  0xb3   :  { %v169_v3 = vsub.s32 %v165_v62, %v168_v2  ;;  %v192_v31 = vsel %vm69_vm12, %v191_v25, %v167_v1  ;;  %485 = vmatpush.msra.mxu2 %v468_v60  ;;  %v466_v62 = vld [vmem:[#allocation5 + $0x38] sm:$0xff]  ;;  %v463_v1 = vld [vmem:[#allocation5 + $0x20] sm:$0xff] }
  0xb4   :  { %v194_v34 = vsel %vm68_vm13, 0, %v192_v31  ;;  %v462_v2 = vld [vmem:[#allocation5 + $0x18] sm:$0xff] }
  0xb5   :  { %vm170_vm10 = vcmp.lt.s32.totalorder %v169_v3, 0  ;;  %v171_v5 = vsub.s32 0, %v169_v3  ;;  %v365_v39 = vadd.s32 3, %v194_v34  ;;  %v211_v44 = vand.u32 3, %v194_v34  ;;  %486 = vmatpush.msra.mxu2 %v467_v61 }
  0xb7   :  { %v172_v6 = vsel %vm170_vm10, %v171_v5, %v169_v3  ;;  %v366_v46 = vand.u32 3, %v365_v39  ;;  %vm212_vm14 = vcmp.lt.s32.totalorder %v211_v44, 2  ;;  %vm213_vm15 = vcmp.eq.s32.totalorder %v211_v44, 0  ;;  %487 = vmatpush.msra.mxu2 %v466_v62  ;;  %v460_v5 = vld [vmem:[#allocation5 + $0x8] sm:$0xff] }
  0xb8   :  { %v173_v7 = vclz %v172_v6  ;;  %vm216_vm3 = vcmp.eq.s32.totalorder %v211_v44, 2  ;;  %v459_v6 = vld [vmem:[#allocation5] sm:$0xff] }
  0xb9   :  { %vm367_vm0 = vcmp.lt.s32.totalorder %v366_v46, 2  ;;  %vm368_vm1 = vcmp.eq.s32.totalorder %v366_v46, 0  ;;  %vm371_vm2 = vcmp.eq.s32.totalorder %v366_v46, 2 }
  0xba   :  { %v519_v8 = vadd.s32 4294967294, %v173_v7  ;;  %v538_v7 = vld [vmem:[%s754_s3] ss:$0 sm:$0xff] }
  0xbc   :  { %vm520_vm11 = vcmp.lt.s32.totalorder %v519_v8, 0 }
  0xbd   :  { %v176_v45 = vsel %vm520_vm11, 0, %v519_v8 }
  0xbe   :  { %v177_v10 = vsub.s32 32, %v176_v45  ;;  %v181_v11 = vsub.s32 4294967266, %v176_v45  ;;  %v178_v12 = vshll.u32 %v169_v3, %v176_v45  ;;  %v461_v3 = vld [vmem:[#allocation5 + $0x10] sm:$0xff] }
  0xc0   :  { %v179_v13 = vshrl.u32 %v161_v9, %v177_v10  ;;  %v182_v4 = vadd.s32 127, %v181_v11 }
  0xc2   :  { %v180_v14 = vor.u32 %v179_v13, %v178_v12  ;;  %v183_v15 = vshll.u32 %v182_v4, 23 }
  0xc4   :  { %v184_v19 = vor.u32 4788187, %v183_v15  ;;  %v187_v21 = vcvt.s32.f32 %v180_v14 }
  0xc6   :  { %v185_v20 = vand.u32 2147483647, %v184_v19 }
  0xc8   :  { %v188_v22 = vmul.f32 %v187_v21, %v185_v20 }
  0xca   :  { %v189_v23 = vxor.u32 2147483648, %v188_v22 }
  0xcc   :  { %v190_v24 = vsel %vm69_vm12, %v189_v23, %v188_v22 }
  0xcd   :  { %v193_v26 = vsel %vm68_vm13, %v682_v18, %v190_v24  ;;  %v465_v18 = vld [vmem:[#allocation5 + $0x30] sm:$0xff] }
  0xce   :  { %v195_v27 = vmul.f32 %v193_v26, %v193_v26  ;;  %488 = vmatpush.msra.mxu2 %v465_v18 }
  0xd0   :  { %v196_v28 = vmul.f32 -0.001358992, %v195_v27  ;;  %v203_v29 = vmul.f32 -0.00019511016, %v195_v27  ;;  %489 = vmatpush.msra.mxu2 %v464_v63 }
  0xd2   :  { %v197_v32 = vadd.f32 0.041655596, %v196_v28  ;;  %v204_v33 = vadd.f32 0.008332121, %v203_v29  ;;  %490 = vmatpush.msra.mxu2 %v463_v1 }
  0xd4   :  { %v198_v35 = vmul.f32 %v197_v32, %v195_v27  ;;  %v205_v36 = vmul.f32 %v204_v33, %v195_v27  ;;  %491 = vmatpush.msra.mxu2 %v462_v2 }
  0xd6   :  { %v199_v37 = vadd.f32 -0.4999988, %v198_v35  ;;  %v206_v38 = vadd.f32 -0.16666654, %v205_v36  ;;  %492 = vmatpush.msra.mxu2 %v461_v3 }
  0xd8   :  { %v200_v40 = vmul.f32 %v199_v37, %v195_v27  ;;  %v207_v42 = vmul.f32 %v206_v38, %v195_v27  ;;  %493 = vmatpush.msra.mxu2 %v460_v5 }
  0xda   :  { %v201_v43 = vadd.f32 1.0, %v200_v40  ;;  %v208_v30 = vadd.f32 1.0, %v207_v42  ;;  %494 = vmatpush.msra.mxu2 %v459_v6 }
  0xdc   :  { %v209_v47 = vmul.f32 %v208_v30, %v193_v26  ;;  %v217_v48 = vxor.u32 2147483648, %v201_v43 }
  0xde   :  { %v214_v49 = vxor.u32 2147483648, %v209_v47  ;;  %v373_v52 = vsel %vm371_vm2, %v217_v48, %v209_v47  ;;  %v218_v54 = vsel %vm216_vm3, %v217_v48, %v209_v47 }
  0xe0   :  { %v370_v51 = vsel %vm368_vm1, %v201_v43, %v214_v49  ;;  %v215_v53 = vsel %vm213_vm15, %v201_v43, %v214_v49 }
  0xe1   :  { %v374_v55 = vsel %vm367_vm0, %v370_v51, %v373_v52  ;;  %v219_v56 = vsel %vm212_vm14, %v215_v53, %v218_v54 }
  0xe2   :  { %v375_v41 = vsel %vm210_vm4, nan, %v374_v55  ;;  %v220_v50 = vsel %vm210_vm4, nan, %v219_v56 }
  0xe3   :  { %424 = vmatmul.f32.vlgmr.msra.gmra.mxu0 %v375_v41  ;;  %444 = vmatmul.f32.vlgmr.msra.gmra.mxu1 %v220_v50 }
 0x160   :  { %v425_v8 = vpop.f32.mrf.mxu0  ;;  %v445_v45 = vpop.f32.mrf.mxu1 }
 0x161   :  { %v446_v9 = vadd.f32 %v445_v45, %v425_v8 }
 0x163   :  { %v452_v10 = vadd.f32 %v538_v7, %v446_v9 }
 0x165   :  { %v453_v11 = vsub.f32 0.0, %v452_v10 }
 0x167   :  { %v454_v12 = vmul.f32 1.442695, %v453_v11 }
 0x169   :  { %540 = vpow2.f32 %v454_v12 }
 0x16f   :  { %v541_v13 = vpop.eup %540 }
 0x170   :  { %v456_v4 = vadd.f32 1.0, %v541_v13 }
 0x172   :  { %542 = vrcp.f32 %v456_v4 }
 0x178   :  { %v543_v14 = vpop.eup %542 }
 0x179   :  { %v458_v15 = vmul.f32 %v543_v14, %v452_v10 }
 0x17b   :  { %495 = vmatmul.f32.vlgmr.msra.gmra.mxu2 %v458_v15 }
 0x1fe   :  { %v496_v17 = vpop.f32.mrf.mxu2 }
 0x1ff   :  { %v497_v19 = vadd.f32 %v539_v16, %v496_v17 }
 0x201   :  { %499 = vst [vmem:[#allocation7] sm:$0xff] %v497_v19 }
 0x202   :  { %510 = dma.vmem_to_hbm [thread:$0]  %s506_s14, 128, %s508_s16, [#allocation4]  }
 0x203   :  { %620 = dma.done.wait [#allocation4], 128  }
 0x204   :  { %621 = vsyncadd [#allocation4], 4294967168 }
 0x205   :  { %515 = vsyncpa [#allocation3], 1 }
 0x206   :  { %516 = vsyncpa [#allocation6], 1 }
 0x207   :  { %517 = vsyncpa [#allocation4], 1 }

</bundles_post_ra>
